<compile_context>
chip_gen: v7x
topology: tpu7x:2x2x1
jax: 0.10.0
libtpu: 0.0.40
codegen_flags: <defaults>
</compile_context>

<pallas_src>
import functools

import jax
import jax.numpy as jnp
from jax import lax
from jax.experimental import pallas as pl
from jax.experimental.pallas import tpu as pltpu

D_IN, D_H1, D_H2, D_OUT = 10, 50, 20, 1
_LANES = 128


def _mlp_kernel(x_ref, w1_ref, b1_ref, w2_ref, b2_ref, w3_ref, b3_ref, o_ref):
    # x_ref: (TB, D_IN) f32 (native layout, contiguous per-tile DMA)
    # w1/w2: (out, in) bf16;  w3_ref: (D_H2, 1) f32
    # biases: (out, 1) f32;   o_ref: (1, TB) f32
    x_bf = x_ref[...].astype(jnp.bfloat16)                          # (TB, 10)

    # fc1 + relu: W1 @ x^T on the MXU (rhs contracted on its last dim),
    # f32 accumulation; bias add / ReLU stay in f32 (v5e-friendly).
    h1 = lax.dot_general(w1_ref[...], x_bf, (((1,), (1,)), ((), ())),
                         preferred_element_type=jnp.float32)        # (50, TB)
    h1 = jnp.maximum(h1 + b1_ref[...], 0.0)

    # fc2 + relu
    h2 = jnp.dot(w2_ref[...], h1.astype(jnp.bfloat16),
                 preferred_element_type=jnp.float32)                # (20, TB)
    h2 = jnp.maximum(h2 + b2_ref[...], 0.0)

    # fc3 + relu: one output feature -> VPU mul + cross-sublane reduce,
    # skipping an MXU pass that would use a single output row.
    h3 = jnp.sum(h2 * w3_ref[...], axis=0, keepdims=True) + b3_ref[...]
    o_ref[...] = jnp.maximum(h3, 0.0).astype(o_ref.dtype)           # (1, TB)


def _pick_tiling(batch, requested_tile):
    """Static (Python-int) tile selection.

    * lane-align the batch (128) so output stores are full-lane, unmasked
    * cap at the requested tile (default 512: amortizes per-step overhead,
      keeps h1/h2 vreg spills modest -- don't jump to 8K+ columns)
    * split into >=2 tiles when the batch allows so the "parallel" grid axis
      can shard across both TensorCores on v7x (costs nothing on v5e/v6e)
    """
    pb = -(-batch // _LANES) * _LANES
    tile = min(requested_tile, pb)
    tile = max(_LANES, (tile // _LANES) * _LANES)
    if pb >= 2 * _LANES:
        tile = min(tile, max(_LANES, (pb // 2) // _LANES * _LANES))
    pb = -(-batch // tile) * tile
    return tile, pb


@functools.partial(jax.jit, static_argnames=("tile_b",))
def simplenet_forward(x, params, *, tile_b=512):
    """x: [B, 10] f32; params in PyTorch layout (W: (out,in), b: (out,)).
    Returns [B, 1] f32 (matching nn.Linear / F.relu semantics)."""
    w1, b1, w2, b2, w3, b3 = params
    B = x.shape[0]
    tb, pb = _pick_tiling(B, tile_b)
    n_tiles = pb // tb

    # Native-layout input; pad rows only if B isn't tile-aligned (cheap, and
    # padded columns are sliced off at the end).
    if pb != B:
        x = jnp.pad(x, ((0, pb - B), (0, 0)))

    w1b = w1.astype(jnp.bfloat16)                     # (50, 10)  MXU operand
    w2b = w2.astype(jnp.bfloat16)                     # (20, 50)  MXU operand
    w3t = w3.T.astype(jnp.float32)                    # (20, 1)   VPU operand
    b1c = b1.reshape(D_H1, 1).astype(jnp.float32)
    b2c = b2.reshape(D_H2, 1).astype(jnp.float32)
    b3c = b3.reshape(D_OUT, 1).astype(jnp.float32)

    # Constant index_maps -> weights/biases stay resident in VMEM across tiles.
    const = lambda a: pl.BlockSpec(a.shape, lambda i: (0, 0))

    out = pl.pallas_call(
        _mlp_kernel,
        out_shape=jax.ShapeDtypeStruct((1, pb), jnp.float32),
        grid_spec=pltpu.PrefetchScalarGridSpec(
            num_scalar_prefetch=0,
            grid=(n_tiles,),
            in_specs=[
                pl.BlockSpec((tb, D_IN), lambda i: (i, 0)),   # contiguous x tiles
                const(w1b), const(b1c),
                const(w2b), const(b2c),
                const(w3t), const(b3c),
            ],
            out_specs=pl.BlockSpec((1, tb), lambda i: (0, i)),  # lane-dense out
        ),
        compiler_params=pltpu.CompilerParams(
            dimension_semantics=("parallel",)),      # both TCs on v7x if >=2 tiles
        cost_estimate=pl.CostEstimate(
            flops=2 * pb * (D_IN * D_H1 + D_H1 * D_H2 + D_H2 * D_OUT),
            transcendentals=0,
            bytes_accessed=(pb * D_IN * 4 + pb * 4
                            + 2 * (D_IN * D_H1 + D_H1 * D_H2)
                            + 4 * (D_H2 * D_OUT + D_H1 + D_H2 + D_OUT)),
        ),
    )(x, w1b, b1c, w2b, b2c, w3t, b3c)

    # (1, pb) -> (B, 1): prefix slice + transpose of a 1-row slab (a reshape).
    return out[:, :B].T


def init_params(key):
    """PyTorch nn.Linear layout + U(-1/sqrt(fan_in), 1/sqrt(fan_in)) init."""
    dims = [(D_IN, D_H1), (D_H1, D_H2), (D_H2, D_OUT)]
    params = []
    for fan_in, fan_out in dims:
        key, kw, kb = jax.random.split(key, 3)
        bound = 1.0 / (fan_in ** 0.5)
        w = jax.random.uniform(kw, (fan_out, fan_in), jnp.float32, -bound, bound)
        b = jax.random.uniform(kb, (fan_out,), jnp.float32, -bound, bound)
        params += [w, b]
    return tuple(params)


def reference_forward(x, params, matmul_dtype=jnp.float32):
    """Pure-JAX reference; `matmul_dtype=bf16` mirrors the kernel's MXU
    operand rounding (f32 accumulation / bias / relu in both cases)."""
    w1, b1, w2, b2, w3, b3 = params
    c = lambda a: a.astype(matmul_dtype)
    h = jnp.maximum(
        jnp.dot(c(x), c(w1).T, preferred_element_type=jnp.float32) + b1, 0.0)
    h = jnp.maximum(
        jnp.dot(c(h), c(w2).T, preferred_element_type=jnp.float32) + b2, 0.0)
    return jnp.maximum(
        jnp.dot(h, w3.T, preferred_element_type=jnp.float32) + b3, 0.0)


if __name__ == "__main__":
    key = jax.random.PRNGKey(0)
    kx, kp = jax.random.split(key)
    params = init_params(kp)

    # Matches the module's usage: x = torch.rand([100, 10]) -> single-tile path.
    x = jax.random.uniform(kx, (100, D_IN), jnp.float32)
    out = jax.block_until_ready(simplenet_forward(x, params))
    assert out.shape == (100, 1)

    ref_bf16 = reference_forward(x, params, matmul_dtype=jnp.bfloat16)
    assert jnp.allclose(out, ref_bf16, atol=2e-3, rtol=2e-3), float(
        jnp.max(jnp.abs(out - ref_bf16)))
    ref_f32 = reference_forward(x, params, matmul_dtype=jnp.float32)
    assert jnp.allclose(out, ref_f32, atol=3e-2, rtol=3e-2)

    # Also exercise the padded, multi-tile path (grid > 1; v7x uses both TCs).
    x2 = jax.random.uniform(jax.random.PRNGKey(1), (300, D_IN), jnp.float32)
    out2 = jax.block_until_ready(simplenet_forward(x2, params))
    assert out2.shape == (300, 1)
    ref2 = reference_forward(x2, params, matmul_dtype=jnp.bfloat16)
    assert jnp.allclose(out2, ref2, atol=2e-3, rtol=2e-3), float(
        jnp.max(jnp.abs(out2 - ref2)))

    print("KERNEL_OK")
</pallas_src>

<mosaic_0001>
module attributes {stable_mosaic.version = 11 : i64} {
  func.func @_mlp_kernel(%arg0: i32, %arg1: memref<128x10xf32, #tpu.memory_space<vmem>>, %arg2: memref<50x10xbf16, #tpu.memory_space<vmem>>, %arg3: memref<50x1xf32, #tpu.memory_space<vmem>>, %arg4: memref<20x50xbf16, #tpu.memory_space<vmem>>, %arg5: memref<20x1xf32, #tpu.memory_space<vmem>>, %arg6: memref<20x1xf32, #tpu.memory_space<vmem>>, %arg7: memref<1x1xf32, #tpu.memory_space<vmem>>, %arg8: memref<1x128xf32, #tpu.memory_space<vmem>>) attributes {dimension_semantics = [#tpu.dimension_semantics<parallel>], iteration_bounds = array<i64: 1>, scalar_prefetch = 0 : i64, scratch_operands = 0 : i64, tpu.core_type = #tpu.core_type<tc>, window_params = [{transform_indices = @transform_0, window_bounds = array<i64: 128, 10>}, {pipeline_mode = #tpu.pipeline_mode<synchronous>, transform_indices = @transform_1, window_bounds = array<i64: 50, 10>}, {pipeline_mode = #tpu.pipeline_mode<synchronous>, transform_indices = @transform_2, window_bounds = array<i64: 50, 1>}, {pipeline_mode = #tpu.pipeline_mode<synchronous>, transform_indices = @transform_3, window_bounds = array<i64: 20, 50>}, {pipeline_mode = #tpu.pipeline_mode<synchronous>, transform_indices = @transform_4, window_bounds = array<i64: 20, 1>}, {pipeline_mode = #tpu.pipeline_mode<synchronous>, transform_indices = @transform_5, window_bounds = array<i64: 20, 1>}, {pipeline_mode = #tpu.pipeline_mode<synchronous>, transform_indices = @transform_6, window_bounds = array<i64: 1, 1>}, {transform_indices = @transform_7, window_bounds = array<i64: 1, 128>}]} {
    %c0 = arith.constant 0 : index
    %c0_0 = arith.constant 0 : index
    %0 = vector.load %arg1[%c0, %c0_0] : memref<128x10xf32, #tpu.memory_space<vmem>>, vector<128x10xf32>
    %1 = arith.truncf %0 : vector<128x10xf32> to vector<128x10xbf16>
    %c0_1 = arith.constant 0 : index
    %c0_2 = arith.constant 0 : index
    %2 = vector.load %arg2[%c0_1, %c0_2] : memref<50x10xbf16, #tpu.memory_space<vmem>>, vector<50x10xbf16>
    %cst = arith.constant dense<0.000000e+00> : vector<50x128xf32>
    %3 = tpu.matmul %2, %1, %cst {dimension_numbers = #tpu.dot_dimension_numbers<[1], [1], [0], [0], [0, 0, 1, 0], [], []>} : vector<50x10xbf16>, vector<128x10xbf16>, vector<50x128xf32> -> vector<50x128xf32>
    %c0_3 = arith.constant 0 : index
    %c0_4 = arith.constant 0 : index
    %4 = vector.load %arg3[%c0_3, %c0_4] : memref<50x1xf32, #tpu.memory_space<vmem>>, vector<50x1xf32>
    %5 = vector.broadcast %4 : vector<50x1xf32> to vector<50x128xf32>
    %6 = arith.addf %3, %5 : vector<50x128xf32>
    %cst_5 = arith.constant 0.000000e+00 : f32
    %7 = vector.broadcast %cst_5 : f32 to vector<50x128xf32>
    %8 = arith.maximumf %6, %7 : vector<50x128xf32>
    %c0_6 = arith.constant 0 : index
    %c0_7 = arith.constant 0 : index
    %9 = vector.load %arg4[%c0_6, %c0_7] : memref<20x50xbf16, #tpu.memory_space<vmem>>, vector<20x50xbf16>
    %10 = arith.truncf %8 : vector<50x128xf32> to vector<50x128xbf16>
    %cst_8 = arith.constant dense<0.000000e+00> : vector<20x128xf32>
    %11 = tpu.matmul %9, %10, %cst_8 {dimension_numbers = #tpu.dot_dimension_numbers<[1], [0], [0], [1], [0, 0, 1, 1], [], []>} : vector<20x50xbf16>, vector<50x128xbf16>, vector<20x128xf32> -> vector<20x128xf32>
    %c0_9 = arith.constant 0 : index
    %c0_10 = arith.constant 0 : index
    %12 = vector.load %arg5[%c0_9, %c0_10] : memref<20x1xf32, #tpu.memory_space<vmem>>, vector<20x1xf32>
    %13 = vector.broadcast %12 : vector<20x1xf32> to vector<20x128xf32>
    %14 = arith.addf %11, %13 : vector<20x128xf32>
    %cst_11 = arith.constant 0.000000e+00 : f32
    %15 = vector.broadcast %cst_11 : f32 to vector<20x128xf32>
    %16 = arith.maximumf %14, %15 : vector<20x128xf32>
    %c0_12 = arith.constant 0 : index
    %c0_13 = arith.constant 0 : index
    %17 = vector.load %arg6[%c0_12, %c0_13] : memref<20x1xf32, #tpu.memory_space<vmem>>, vector<20x1xf32>
    %18 = vector.broadcast %17 : vector<20x1xf32> to vector<20x128xf32>
    %19 = arith.mulf %16, %18 : vector<20x128xf32>
    %cst_14 = arith.constant dense<0.000000e+00> : vector<128xf32>
    %20 = vector.multi_reduction <add>, %19, %cst_14 [0] : vector<20x128xf32> to vector<128xf32>
    %21 = vector.shape_cast %20 : vector<128xf32> to vector<1x128xf32>
    %c0_15 = arith.constant 0 : index
    %c0_16 = arith.constant 0 : index
    %22 = vector.load %arg7[%c0_15, %c0_16] : memref<1x1xf32, #tpu.memory_space<vmem>>, vector<1x1xf32>
    %23 = vector.broadcast %22 : vector<1x1xf32> to vector<1x128xf32>
    %24 = arith.addf %21, %23 : vector<1x128xf32>
    %cst_17 = arith.constant 0.000000e+00 : f32
    %25 = vector.broadcast %cst_17 : f32 to vector<1x128xf32>
    %26 = arith.maximumf %24, %25 : vector<1x128xf32>
    %c0_18 = arith.constant 0 : index
    %c0_19 = arith.constant 0 : index
    %27 = vector.load %arg8[%c0_18, %c0_19] : memref<1x128xf32, #tpu.memory_space<vmem>>, vector<1x128xf32>
    tpu.vector_store %arg8[%c0_18, %c0_19], %26 {strides = array<i32>} : memref<1x128xf32, #tpu.memory_space<vmem>>, vector<1x128xf32>,
    return
  }
  func.func @transform_0(%arg0: i32) -> (i32, i32) {
    %c0_i32 = arith.constant 0 : i32
    %c0_i32_0 = arith.constant 0 : i32
    return %arg0, %c0_i32 : i32, i32
  }
  func.func @transform_1(%arg0: i32) -> (i32, i32) {
    %c0_i32 = arith.constant 0 : i32
    %c0_i32_0 = arith.constant 0 : i32
    %c0_i32_1 = arith.constant 0 : i32
    return %c0_i32, %c0_i32_0 : i32, i32
  }
  func.func @transform_2(%arg0: i32) -> (i32, i32) {
    %c0_i32 = arith.constant 0 : i32
    %c0_i32_0 = arith.constant 0 : i32
    %c0_i32_1 = arith.constant 0 : i32
    return %c0_i32, %c0_i32_0 : i32, i32
  }
  func.func @transform_3(%arg0: i32) -> (i32, i32) {
    %c0_i32 = arith.constant 0 : i32
    %c0_i32_0 = arith.constant 0 : i32
    %c0_i32_1 = arith.constant 0 : i32
    return %c0_i32, %c0_i32_0 : i32, i32
  }
  func.func @transform_4(%arg0: i32) -> (i32, i32) {
    %c0_i32 = arith.constant 0 : i32
    %c0_i32_0 = arith.constant 0 : i32
    %c0_i32_1 = arith.constant 0 : i32
    return %c0_i32, %c0_i32_0 : i32, i32
  }
  func.func @transform_5(%arg0: i32) -> (i32, i32) {
    %c0_i32 = arith.constant 0 : i32
    %c0_i32_0 = arith.constant 0 : i32
    %c0_i32_1 = arith.constant 0 : i32
    return %c0_i32, %c0_i32_0 : i32, i32
  }
  func.func @transform_6(%arg0: i32) -> (i32, i32) {
    %c0_i32 = arith.constant 0 : i32
    %c0_i32_0 = arith.constant 0 : i32
    %c0_i32_1 = arith.constant 0 : i32
    return %c0_i32, %c0_i32_0 : i32, i32
  }
  func.func @transform_7(%arg0: i32) -> (i32, i32) {
    %c0_i32 = arith.constant 0 : i32
    %c0_i32_0 = arith.constant 0 : i32
    return %c0_i32, %arg0 : i32, i32
  }
}

</mosaic_0001>

<bundles_post_ra>
// kernel: simplenet_forward.1
= control target key start
LH: loop header
LB: loop body
LE: loop exit
PB: predicated region body
PF: predicated region fallthrough
CT: control target
= control target key end

     0   :  { %vm120_vm0 = vcmask 80896   ;;  %v455_v3 = vmov 0   ;;  %vm261_vm1 = vcmask 408576   ;;  %vm268_vm2 = vcmask 1040384   ;;  %s629_s0 = inlined_call_operand.vmem [shape: f32[128,10], index: 0, kind: input, shape index: {}]   ;;  %s630_s6 = inlined_call_operand.<no memory space> [shape: f32[1,1], index: 6, kind: input, shape index: {}]   ;;  %s631_s1 = inlined_call_operand.vmem [shape: bf16[50,10], index: 1, kind: input, shape index: {}]   ;;  %s632_s2 = inlined_call_operand.vmem [shape: f32[50,1], index: 2, kind: input, shape index: {}]   ;;  %s633_s4 = inlined_call_operand.vmem [shape: f32[20,1], index: 4, kind: input, shape index: {}]   ;;  %s634_s5 = inlined_call_operand.vmem [shape: f32[20,1], index: 5, kind: input, shape index: {}]   ;;  %s635_s3 = inlined_call_operand.vmem [shape: bf16[20,50], index: 3, kind: input, shape index: {}]   ;;  %s636_s7 = inlined_call_operand.vmem [shape: f32[1,128], index: 7, kind: output, shape index: {}]  }
   0x1   :  { %v29_v0 = vld [vmem:[%s629_s0] sm:$0xff]  ;;  %v30_v1 = vld [vmem:[%s629_s0 + $0x8] sm:$0xff]  ;;  %v31_v2 = vld [vmem:[%s629_s0 + $0x10] sm:$0xff]  ;;  %447 = vset.pattern.permute.xlu0 %v455_v3  ;;  %448 = vset.pattern.permute.xlu1 %v455_v3  ;;  %v12_v4 = vstv %s630_s6  ;;  %vm345_vm3 = vcmask 1043456  }
   0x2   :  { %v45_v5 = vpack.c.bf16 %v30_v1, %v29_v0  ;;  %v32_v6 = vld [vmem:[%s629_s0 + $0x18] sm:$0xff]  ;;  %13 = vst [vmem:[#allocation2] sm:$0x1] %v12_v4  ;;  %v33_v9 = vld [vmem:[%s629_s0 + $0x20] sm:$0xff]  ;;  %v34_v10 = vld [vmem:[%s629_s0 + $0x28] sm:$0xff] }
   0x3   :  { %v46_v7 = vpack.c.bf16 %v32_v6, %v31_v2  ;;  %v449_v11 = vld [vmem:[%s631_s1] sm:$0xff]   ;;  %v47_v14 = vpack.c.bf16 %v34_v10, %v33_v9  ;;  %v62_v15 = vld [vmem:[%s632_s2 + $0x10] sm:$0xff]  ;;  %v61_v16 = vld [vmem:[%s632_s2 + $0x8] sm:$0xff] }
   0x4   :  { %437 = vmatprep.subr.msk.bf16.mxu0 %vm120_vm0, %v45_v5  ;;  %v134_v8 = vsel %vm120_vm0, %v45_v5, 0  ;;  %417 = vmatprep.mubr.msk.bf16.mxu0 %vm120_vm0, %v449_v11  ;;  %v60_v12 = vld [vmem:[%s632_s2] sm:$0xff]  ;;  %v63_v17 = vld [vmem:[%s632_s2 + $0x18] sm:$0xff]  ;;  %v35_v18 = vld [vmem:[%s629_s0 + $0x30] sm:$0xff] }
   0x5   :  { %402 = vmatpush3.bf16.xpose.msra.mxu0 %v134_v8  ;;  %v137_v13 = vsel %vm120_vm0, %v46_v7, 0  ;;  %69 = vperm.xlu0 %447, %v60_v12   ;;  %v36_v19 = vld [vmem:[%s629_s0 + $0x38] sm:$0xff]  ;;  %v64_v20 = vld [vmem:[%s632_s2 + $0x20] sm:$0xff]  ;;  %v65_v21 = vld [vmem:[%s632_s2 + $0x28] sm:$0xff]  ;;  %v140_v22 = vsel %vm120_vm0, %v47_v14, 0 }
   0x6   :  { %438 = vmatprep.subr.msk.bf16.mxu0 %vm120_vm0, %v46_v7  ;;  %79 = vperm.xlu1 %448, %v62_v15   ;;  %v48_v23 = vpack.c.bf16 %v36_v19, %v35_v18  ;;  %v66_v24 = vld [vmem:[%s632_s2 + $0x30] sm:$0x3]  ;;  %v235_v25 = vld [vmem:[%s633_s4] sm:$0xff]  ;;  %v38_v27 = vld [vmem:[%s629_s0 + $0x48] sm:$0xff] }
   0x7   :  { %v37_v26 = vld [vmem:[%s629_s0 + $0x40] sm:$0xff]  ;;  %v236_v28 = vld [vmem:[%s633_s4 + $0x8] sm:$0xff]  ;;  %v237_v29 = vld [vmem:[%s633_s4 + $0x10] sm:$0xf] }
   0x8   :  { %v143_v30 = vsel %vm120_vm0, %v48_v23, 0  ;;  %v49_v31 = vpack.c.bf16 %v38_v27, %v37_v26  ;;  %v323_v32 = vld [vmem:[%s634_s5] sm:$0xff]  ;;  %v324_v33 = vld [vmem:[%s634_s5 + $0x8] sm:$0xff]  ;;  %v39_v34 = vld [vmem:[%s629_s0 + $0x50] sm:$0xff] }
   0x9   :  { %74 = vperm.xlu0 %447, %v61_v16   ;;  %v40_v35 = vld [vmem:[%s629_s0 + $0x58] sm:$0xff]  ;;  %v325_v36 = vld [vmem:[%s634_s5 + $0x10] sm:$0xf]  ;;  %v354_v37 = vld [vmem:[#allocation2] sm:$0x1] }
   0xa   :  { %84 = vperm.xlu1 %448, %v63_v17   ;;  %v146_v38 = vsel %vm120_vm0, %v49_v31, 0  ;;  %v50_v39 = vpack.c.bf16 %v40_v35, %v39_v34  ;;  %v41_v40 = vld [vmem:[%s629_s0 + $0x60] sm:$0xff]  ;;  %v42_v41 = vld [vmem:[%s629_s0 + $0x68] sm:$0xff]  ;;  %v43_v44 = vld [vmem:[%s629_s0 + $0x70] sm:$0xff] }
   0xb   :  { %v51_v43 = vpack.c.bf16 %v42_v41, %v41_v40  ;;  %v44_v45 = vld [vmem:[%s629_s0 + $0x78] sm:$0xff]  ;;  %v450_v49 = vld [vmem:[%s631_s1 + $0x8] sm:$0xff]   ;;  %v451_v50 = vld [vmem:[%s631_s1 + $0x10] sm:$0xff]  }
   0xc   :  { %v149_v42 = vsel %vm120_vm0, %v50_v39, 0  ;;  %v52_v47 = vpack.c.bf16 %v44_v45, %v43_v44  ;;  %v452_v51 = vld [vmem:[%s631_s1 + $0x18] ss:$0 sps:$4 sm:$0x11]   ;;  %v453_v52 = vld [vmem:[%s635_s3] sm:$0xff]   ;;  %v360_v45 = vlaneseq }
   0xd   :  { %404 = vmatpush3.bf16.xpose.msra.mxu0 %v137_v13  ;;  %89 = vperm.xlu0 %447, %v64_v20   ;;  %v152_v46 = vsel %vm120_vm0, %v51_v43, 0 }
   0xe   :  { %439 = vmatprep.subr.msk.bf16.mxu0 %vm120_vm0, %v47_v14  ;;  %94 = vperm.xlu1 %448, %v65_v21   ;;  %v155_v48 = vsel %vm120_vm0, %v52_v47, 0 }
   0xf   :  { %433 = vmatprep.mubr.msk.bf16.mxu1 %vm261_vm1, %v453_v52 }
  0x11   :  { %99 = vperm.xlu0 %447, %v66_v24  }
  0x12   :  { %240 = vperm.xlu1 %448, %v235_v25  }
  0x15   :  { %406 = vmatpush3.bf16.xpose.msra.mxu0 %v140_v22  ;;  %245 = vperm.xlu0 %447, %v236_v28  }
  0x16   :  { %440 = vmatprep.subr.msk.bf16.mxu0 %vm120_vm0, %v48_v23  ;;  %250 = vperm.xlu1 %448, %v237_v29   ;;  %v454_v23 = vld [vmem:[%s635_s3 + $0x8] ss:$0 sps:$4 sm:$0x33]  }
  0x19   :  { %328 = vperm.xlu0 %447, %v323_v32  }
  0x1a   :  { %333 = vperm.xlu1 %448, %v324_v33  }
  0x1d   :  { %408 = vmatpush3.bf16.xpose.msra.mxu0 %v143_v30  ;;  %338 = vperm.xlu0 %447, %v325_v36  }
  0x1e   :  { %441 = vmatprep.subr.msk.bf16.mxu0 %vm120_vm0, %v49_v31  ;;  %357 = vperm.xlu1 %448, %v354_v37  }
  0x25   :  { %410 = vmatpush3.bf16.xpose.msra.mxu0 %v146_v38 }
  0x26   :  { %442 = vmatprep.subr.msk.bf16.mxu0 %vm120_vm0, %v50_v39 }
  0x2d   :  { %412 = vmatpush3.bf16.xpose.msra.mxu0 %v149_v42 }
  0x2e   :  { %443 = vmatprep.subr.msk.bf16.mxu0 %vm120_vm0, %v51_v43 }
  0x35   :  { %414 = vmatpush3.bf16.xpose.msra.mxu0 %v152_v46 }
  0x36   :  { %444 = vmatprep.subr.msk.bf16.mxu0 %vm120_vm0, %v52_v47 }
  0x3d   :  { %416 = vmatpush3.bf16.xpose.msra.mxu0 %v155_v48  ;;  %v361_v48 = vshrl.u32 %v360_v45, 7 }
  0x44   :  { %418 = vmatmul.mubr.msk.bf16.vlgmr.msra.gmra.mrb[0].mxu0 %vm120_vm0, %v450_v49 }
  0x45   :  { %421 = vmatprep.mubr.msk.bf16.mxu0 %vm120_vm0, %v451_v50 }
  0x4c   :  { %422 = vmatmul.mubr.msk.bf16.gmra.mrb[4].mxu0 %vm120_vm0, %v452_v51  ;;  %v362_v51 = vsub.s32 0, %v361_v48 }
  0x84   :  { %v70_v53 = vpop.permute.xlu0 %69 }
  0x85   :  { %v80_v54 = vpop.permute.xlu1 %79 }
  0x88   :  { %v75_v55 = vpop.permute.xlu0 %74 }
  0x89   :  { %v85_v59 = vpop.permute.xlu1 %84 }
  0x8c   :  { %v90_v62 = vpop.permute.xlu0 %89 }
  0x8d   :  { %v95_v14 = vpop.permute.xlu1 %94 }
  0x90   :  { %v100_v9 = vpop.permute.xlu0 %99 }
  0x91   :  { %v241_v24 = vpop.permute.xlu1 %240 }
  0x94   :  { %v246_v25 = vpop.permute.xlu0 %245 }
  0x95   :  { %v251_v26 = vpop.permute.xlu1 %250 }
  0x98   :  { %v329_v27 = vpop.permute.xlu0 %328 }
  0x99   :  { %v334_v39 = vpop.permute.xlu1 %333 }
  0x9c   :  { %v339_v37 = vpop.permute.xlu0 %338 }
 0x117   :  { %v419_v56 = vpop.f32.mrb[0].mxu0 }
 0x118   :  { %v200_v57 = vadd.f32 %v419_v56, %v80_v54  ;;  %v191_v58 = vpop.f32.mrb[1].mxu0 }
 0x119   :  { %v192_v60 = vadd.f32 %v191_v58, %v70_v53  ;;  %v420_v61 = vpop.f32.mrb[2].mxu0  ;;  %v358_v53 = vpop.permute.xlu1 %357 }
 0x11a   :  { %v203_v63 = vadd.f32 %v420_v61, %v85_v59  ;;  %v194_v0 = vpop.f32.mrb[3].mxu0  ;;  %v223_v2 = vmax.f32 %v200_v57, 0.0 }
 0x11b   :  { %v195_v1 = vadd.f32 %v194_v0, %v75_v55  ;;  %v221_v4 = vmax.f32 %v192_v60, 0.0  ;;  %v363_v55 = vrot.slane %v358_v53, %v362_v51 }
 0x11c   :  { %v224_v3 = vmax.f32 %v203_v63, 0.0 }
 0x11d   :  { %v222_v5 = vmax.f32 %v195_v1, 0.0 }
 0x11e   :  { %v232_v6 = vpack.c.bf16 %v224_v3, %v223_v2 }
 0x11f   :  { %v423_v7 = vpop.f32.mrb[4].mxu0  ;;  %v231_v8 = vpack.c.bf16 %v222_v5, %v221_v4 }
 0x120   :  { %v207_v10 = vpop.f32.mrb[5].mxu0  ;;  %v216_v11 = vadd.f32 %v423_v7, %v100_v9 }
 0x121   :  { %v208_v12 = vadd.f32 %v207_v10, %v90_v62  ;;  %v424_v13 = vpop.f32.mrb[6].mxu0  ;;  %425 = vmatprep.subr.bf16.mxu1 %v231_v8 }
 0x122   :  { %v210_v15 = vpop.f32.mrb[7].mxu0  ;;  %426 = vmatpush3.bf16.msra.mxu1 %v231_v8  ;;  %v227_v17 = vmax.f32 %v216_v11, 0.0 }
 0x123   :  { %v211_v16 = vadd.f32 %v210_v15, %v95_v14  ;;  %427 = vmatprep.subr.bf16.mxu1 %v232_v6  ;;  %v225_v18 = vmax.f32 %v208_v12, 0.0 }
 0x124   :  { %v234_v21 = vpack.c.bf16 %v227_v17, %v227_v17 }
 0x125   :  { %v226_v19 = vmax.f32 %v211_v16, 0.0 }
 0x126   :  { %428 = vmatpush3.bf16.msra.mxu1 %v232_v6  ;;  %v270_v22 = vsel %vm268_vm2, %v234_v21, 0 }
 0x127   :  { %v233_v20 = vpack.c.bf16 %v226_v19, %v225_v18 }
 0x129   :  { %429 = vmatprep.subr.bf16.mxu1 %v233_v20 }
 0x12a   :  { %430 = vmatpush3.bf16.msra.mxu1 %v233_v20 }
 0x12b   :  { %445 = vmatprep.subr.msk.bf16.mxu1 %vm268_vm2, %v234_v21 }
 0x12e   :  { %432 = vmatpush3.bf16.msra.mxu1 %v270_v22 }
 0x131   :  { %434 = vmatmul.mubr.msk.bf16.vlgmr.msra.gmra.mrb[0].mxu1 %vm261_vm1, %v454_v23 }
 0x204   :  { %v435_v28 = vpop.f32.mrb[0].mxu1 }
 0x205   :  { %v315_v29 = vadd.f32 %v435_v28, %v251_v26  ;;  %v306_v30 = vpop.f32.mrb[1].mxu1 }
 0x206   :  { %v307_v31 = vadd.f32 %v306_v30, %v241_v24  ;;  %v436_v32 = vpop.f32.mrb[2].mxu1 }
 0x207   :  { %v322_v33 = vmax.f32 %v315_v29, 0.0  ;;  %v309_v34 = vpop.f32.mrb[3].mxu1 }
 0x208   :  { %v320_v35 = vmax.f32 %v307_v31, 0.0  ;;  %v310_v36 = vadd.f32 %v309_v34, %v246_v25 }
 0x209   :  { %v343_v40 = vmul.f32 %v339_v37, %v322_v33 }
 0x20a   :  { %v321_v38 = vmax.f32 %v310_v36, 0.0  ;;  %v341_v41 = vmul.f32 %v329_v27, %v320_v35 }
 0x20b   :  { %v346_v44 = vsel %vm345_vm3, %v343_v40, 0.0 }
 0x20c   :  { %v342_v42 = vmul.f32 %v334_v39, %v321_v38 }
 0x20e   :  { %v344_v43 = vadd.f32 %v342_v42, %v341_v41 }
 0x210   :  { %v347_v46 = vadd.f32 %v346_v44, %v344_v43 }
 0x212   :  { %v348_v47 = vrot.slane %v347_v46, 4 }
 0x214   :  { %v349_v49 = vadd.f32 %v348_v47, %v347_v46 }
 0x216   :  { %v350_v50 = vrot.slane %v349_v49, 2 }
 0x218   :  { %v351_v52 = vadd.f32 %v350_v50, %v349_v49 }
 0x21a   :  { %v352_v54 = vrot.slane %v351_v52, 1 }
 0x21c   :  { %v353_v56 = vadd.f32 %v352_v54, %v351_v52 }
 0x21e   :  { %v364_v57 = vadd.f32 %v363_v55, %v353_v56 }
 0x220   :  { %v365_v58 = vmax.f32 %v364_v57, 0.0 }
 0x222   :  { %366 = vst [vmem:[%s636_s7] sm:$0x1] %v365_v58 }

</bundles_post_ra>
